<compile_context>
chip_gen: v7x
topology: tpu7x:2x2x1
jax: 0.10.0
libtpu: 0.0.40
codegen_flags: <defaults>
</compile_context>

<pallas_src>
import jax
import jax.numpy as jnp
from jax.experimental import pallas as pl
from jax.experimental.pallas import tpu as pltpu

IN_EPS = 1e-3   # InstanceNorm2d eps used by the module
BN_EPS = 1e-5   # BatchNorm2d default eps


def _oafilter_kernel(x_ref,
                     bn1_s_ref, bn1_h_ref, w1_ref, b1_ref,
                     bn2_s_ref, bn2_h_ref, w2t_ref, b2_ref,
                     bn3_s_ref, bn3_h_ref, w3_ref, b3_ref,
                     out_ref):
    x = x_ref[...]                                    # (C, N) f32, one sample

    def inorm_bn_relu(v, bn_scale, bn_shift):
        # InstanceNorm: per-channel mean / biased var over the N points via a
        # lane reduction; eval-mode BatchNorm(channels) is folded into the
        # inv-std factor (scale) and shift. All f32 on the VPU/EUP.
        mu = jnp.mean(v, axis=-1, keepdims=True)                  # (C, 1)
        d = v - mu
        var = jnp.mean(d * d, axis=-1, keepdims=True)             # (C, 1)
        g = jax.lax.rsqrt(var + IN_EPS) * bn_scale                # (C, 1)
        return jnp.maximum(d * g + bn_shift, 0.0)

    # ---- conv1: InstanceNorm -> BatchNorm(C) -> ReLU -> 1x1 conv over channels ----
    h1 = inorm_bn_relu(x, bn1_s_ref[...], bn1_h_ref[...])
    a = jnp.dot(w1_ref[...], h1.astype(jnp.bfloat16),
                preferred_element_type=jnp.float32) + b1_ref[...]  # (C, N)

    # ---- conv2 (module's trans(1,2) folded into the layout):
    #      BatchNorm(points) -> ReLU -> 1x1 conv over points == right-mul by W2^T ----
    h2 = jnp.maximum(a * bn2_s_ref[...] + bn2_h_ref[...], 0.0).astype(jnp.bfloat16)
    z = jnp.dot(h2, w2t_ref[...], preferred_element_type=jnp.float32)  # (C, N)
    u = a + z + b2_ref[...]                                            # residual

    # ---- conv3: InstanceNorm -> BatchNorm(C) -> ReLU -> 1x1 conv over channels ----
    h3 = inorm_bn_relu(u, bn3_s_ref[...], bn3_h_ref[...])
    v = jnp.dot(w3_ref[...], h3.astype(jnp.bfloat16),
                preferred_element_type=jnp.float32) + b3_ref[...]      # (C, N)

    out_ref[...] = v + x                             # skip connection (shot_cut is None)


def oafilter_forward(x_nchw, params):
    """x_nchw: [B, C, N, 1] float32. Returns [B, C, N, 1] float32."""
    B, C, N, W = x_nchw.shape
    assert W == 1

    x_bcn = x_nchw[..., 0]                           # [B, C, N]; metadata-only squeeze

    # Fold eval-mode BN (running stats + affine) into scale/shift (plain JAX glue).
    def bn_fold(gamma, beta, rm, rv):
        scale = gamma * jax.lax.rsqrt(rv + BN_EPS)
        return scale, beta - rm * scale

    bn1_s, bn1_h = bn_fold(*params["bn1"])           # (C,)
    bn2_s, bn2_h = bn_fold(*params["bn2"])           # (N,)
    bn3_s, bn3_h = bn_fold(*params["bn3"])           # (C,)

    bf16 = jnp.bfloat16
    args = (
        x_bcn,
        bn1_s.reshape(C, 1), bn1_h.reshape(C, 1),
        params["w1"].astype(bf16), params["b1"].reshape(C, 1),
        bn2_s.reshape(1, N), bn2_h.reshape(1, N),
        params["w2"].T.astype(bf16), params["b2"].reshape(1, N),
        bn3_s.reshape(C, 1), bn3_h.reshape(C, 1),
        params["w3"].astype(bf16), params["b3"].reshape(C, 1),
    )

    def inv(shape):
        # Grid-invariant operand: whole array as one block, constant index_map,
        # so it is DMA'd once and not re-fetched per batch step.
        return pl.BlockSpec(shape, lambda b, _n=len(shape): (0,) * _n)

    in_specs = [
        pl.BlockSpec((pl.Squeezed(), C, N), lambda b: (b, 0, 0)),   # x, per-sample tile
        inv((C, 1)), inv((C, 1)), inv((C, C)), inv((C, 1)),         # bn1, w1, b1
        inv((1, N)), inv((1, N)), inv((N, N)), inv((1, N)),         # bn2, w2^T, b2
        inv((C, 1)), inv((C, 1)), inv((C, C)), inv((C, 1)),         # bn3, w3, b3
    ]
    out_spec = pl.BlockSpec((pl.Squeezed(), C, N), lambda b: (b, 0, 0))

    out = pl.pallas_call(
        _oafilter_kernel,
        out_shape=jax.ShapeDtypeStruct((B, C, N), jnp.float32),
        grid=(B,),
        in_specs=in_specs,
        out_specs=out_spec,
        compiler_params=pltpu.CompilerParams(
            dimension_semantics=("parallel",),
            vmem_limit_bytes=48 * 1024 * 1024),
    )(*args)

    return out[..., None]                            # [B, C, N, 1]


def oafilter_reference(x_nchw, params):
    """Pure-JAX reference mirroring the PyTorch graph (eval-mode BN), all f32."""
    x = x_nchw[..., 0]                               # [B, C, N]

    def bn(v, gamma, beta, rm, rv, axis):
        sh = [1, 1, 1]
        sh[axis] = -1
        return (v - rm.reshape(sh)) * jax.lax.rsqrt(rv.reshape(sh) + BN_EPS) \
            * gamma.reshape(sh) + beta.reshape(sh)

    def inorm(v):                                    # over last axis, per sample/channel
        mu = jnp.mean(v, axis=-1, keepdims=True)
        var = jnp.mean((v - mu) ** 2, axis=-1, keepdims=True)
        return (v - mu) * jax.lax.rsqrt(var + IN_EPS)

    # conv1
    h = inorm(x)
    h = bn(h, *params["bn1"], axis=1)
    h = jnp.maximum(h, 0.0)
    a = jnp.einsum("oc,bcn->bon", params["w1"], h) + params["b1"][None, :, None]
    y = jnp.swapaxes(a, 1, 2)                        # [B, N, C]  (trans(1,2))
    # conv2
    h2 = bn(y, *params["bn2"], axis=1)
    h2 = jnp.maximum(h2, 0.0)
    z = jnp.einsum("pq,bqc->bpc", params["w2"], h2) + params["b2"][None, :, None]
    y = y + z
    # conv3
    u = jnp.swapaxes(y, 1, 2)                        # [B, C, N]
    h3 = inorm(u)
    h3 = bn(h3, *params["bn3"], axis=1)
    h3 = jnp.maximum(h3, 0.0)
    v = jnp.einsum("oc,bcn->bon", params["w3"], h3) + params["b3"][None, :, None]
    return (v + x)[..., None]


if __name__ == "__main__":
    B, C, N = 2, 8, 16                               # channels=8, points=16, out_channels=channels
    key = jax.random.PRNGKey(0)
    ks = jax.random.split(key, 16)

    x = jax.random.normal(ks[0], (B, C, N, 1), jnp.float32)

    def bn_params(kg, kb, km, kv, dim):
        return (jax.random.normal(kg, (dim,)) * 0.1 + 1.0,                 # gamma
                jax.random.normal(kb, (dim,)) * 0.1,                        # beta
                jax.random.normal(km, (dim,)) * 0.1,                        # running_mean
                jax.random.uniform(kv, (dim,), minval=0.5, maxval=1.5))     # running_var

    params = {
        "bn1": bn_params(ks[1], ks[2], ks[3], ks[4], C),
        "w1": jax.random.normal(ks[5], (C, C), jnp.float32) * 0.2,
        "b1": jax.random.normal(ks[6], (C,), jnp.float32) * 0.1,
        "bn2": bn_params(ks[7], ks[8], ks[9], ks[10], N),
        "w2": jax.random.normal(ks[11], (N, N), jnp.float32) * 0.2,
        "b2": jax.random.normal(ks[12], (N,), jnp.float32) * 0.1,
        "bn3": bn_params(ks[13], ks[14], ks[15], ks[0], C),
        "w3": jax.random.normal(ks[2], (C, C), jnp.float32) * 0.2,
        "b3": jax.random.normal(ks[3], (C,), jnp.float32) * 0.1,
    }

    out = oafilter_forward(x, params)
    jax.block_until_ready(out)

    ref = oafilter_reference(x, params)
    assert out.shape == (B, C, N, 1)
    # bf16 MXU inputs (f32 accumulation) for the three conv matmuls -> compare
    # against the all-f32 reference with a bf16-appropriate tolerance.
    assert jnp.allclose(out, ref, atol=5e-2, rtol=5e-2), "mismatch vs reference"

    print("KERNEL_OK")
</pallas_src>

<mosaic_0001>
module attributes {stable_mosaic.version = 11 : i64} {
  func.func @_oafilter_kernel(%arg0: i32, %arg1: memref<1x8x16xf32, #tpu.memory_space<vmem>>, %arg2: memref<8x1xf32, #tpu.memory_space<vmem>>, %arg3: memref<8x1xf32, #tpu.memory_space<vmem>>, %arg4: memref<8x8xbf16, #tpu.memory_space<vmem>>, %arg5: memref<8x1xf32, #tpu.memory_space<vmem>>, %arg6: memref<1x16xf32, #tpu.memory_space<vmem>>, %arg7: memref<1x16xf32, #tpu.memory_space<vmem>>, %arg8: memref<16x16xbf16, #tpu.memory_space<vmem>>, %arg9: memref<1x16xf32, #tpu.memory_space<vmem>>, %arg10: memref<8x1xf32, #tpu.memory_space<vmem>>, %arg11: memref<8x1xf32, #tpu.memory_space<vmem>>, %arg12: memref<8x8xbf16, #tpu.memory_space<vmem>>, %arg13: memref<8x1xf32, #tpu.memory_space<vmem>>, %arg14: memref<1x8x16xf32, #tpu.memory_space<vmem>>) attributes {dimension_semantics = [#tpu.dimension_semantics<parallel>], iteration_bounds = array<i64: 2>, scalar_prefetch = 0 : i64, scratch_operands = 0 : i64, tpu.core_type = #tpu.core_type<tc>, window_params = [{transform_indices = @transform_0, window_bounds = array<i64: 1, 8, 16>}, {pipeline_mode = #tpu.pipeline_mode<synchronous>, transform_indices = @transform_1, window_bounds = array<i64: 8, 1>}, {pipeline_mode = #tpu.pipeline_mode<synchronous>, transform_indices = @transform_2, window_bounds = array<i64: 8, 1>}, {pipeline_mode = #tpu.pipeline_mode<synchronous>, transform_indices = @transform_3, window_bounds = array<i64: 8, 8>}, {pipeline_mode = #tpu.pipeline_mode<synchronous>, transform_indices = @transform_4, window_bounds = array<i64: 8, 1>}, {pipeline_mode = #tpu.pipeline_mode<synchronous>, transform_indices = @transform_5, window_bounds = array<i64: 1, 16>}, {pipeline_mode = #tpu.pipeline_mode<synchronous>, transform_indices = @transform_6, window_bounds = array<i64: 1, 16>}, {pipeline_mode = #tpu.pipeline_mode<synchronous>, transform_indices = @transform_7, window_bounds = array<i64: 16, 16>}, {pipeline_mode = #tpu.pipeline_mode<synchronous>, transform_indices = @transform_8, window_bounds = array<i64: 1, 16>}, {pipeline_mode = #tpu.pipeline_mode<synchronous>, transform_indices = @transform_9, window_bounds = array<i64: 8, 1>}, {pipeline_mode = #tpu.pipeline_mode<synchronous>, transform_indices = @transform_10, window_bounds = array<i64: 8, 1>}, {pipeline_mode = #tpu.pipeline_mode<synchronous>, transform_indices = @transform_11, window_bounds = array<i64: 8, 8>}, {pipeline_mode = #tpu.pipeline_mode<synchronous>, transform_indices = @transform_12, window_bounds = array<i64: 8, 1>}, {transform_indices = @transform_13, window_bounds = array<i64: 1, 8, 16>}]} {
    %c0 = arith.constant 0 : index
    %c0_0 = arith.constant 0 : index
    %c0_1 = arith.constant 0 : index
    %0 = vector.load %arg1[%c0, %c0_0, %c0_1] : memref<1x8x16xf32, #tpu.memory_space<vmem>>, vector<1x8x16xf32>
    %1 = vector.shape_cast %0 : vector<1x8x16xf32> to vector<8x16xf32>
    %c0_2 = arith.constant 0 : index
    %c0_3 = arith.constant 0 : index
    %2 = vector.load %arg2[%c0_2, %c0_3] : memref<8x1xf32, #tpu.memory_space<vmem>>, vector<8x1xf32>
    %c0_4 = arith.constant 0 : index
    %c0_5 = arith.constant 0 : index
    %3 = vector.load %arg3[%c0_4, %c0_5] : memref<8x1xf32, #tpu.memory_space<vmem>>, vector<8x1xf32>
    %cst = arith.constant dense<0.000000e+00> : vector<8xf32>
    %4 = vector.multi_reduction <add>, %1, %cst [1] : vector<8x16xf32> to vector<8xf32>
    %5 = vector.shape_cast %4 : vector<8xf32> to vector<8x1xf32>
    %cst_6 = arith.constant 1.600000e+01 : f32
    %6 = vector.broadcast %cst_6 : f32 to vector<8x1xf32>
    %7 = arith.divf %5, %6 : vector<8x1xf32>
    %8 = vector.broadcast %7 : vector<8x1xf32> to vector<8x16xf32>
    %9 = arith.subf %1, %8 : vector<8x16xf32>
    %10 = arith.mulf %9, %9 : vector<8x16xf32>
    %cst_7 = arith.constant dense<0.000000e+00> : vector<8xf32>
    %11 = vector.multi_reduction <add>, %10, %cst_7 [1] : vector<8x16xf32> to vector<8xf32>
    %12 = vector.shape_cast %11 : vector<8xf32> to vector<8x1xf32>
    %cst_8 = arith.constant 1.600000e+01 : f32
    %13 = vector.broadcast %cst_8 : f32 to vector<8x1xf32>
    %14 = arith.divf %12, %13 : vector<8x1xf32>
    %cst_9 = arith.constant 1.000000e-03 : f32
    %15 = vector.broadcast %cst_9 : f32 to vector<8x1xf32>
    %16 = arith.addf %14, %15 : vector<8x1xf32>
    %17 = math.rsqrt %16 : vector<8x1xf32>
    %18 = arith.mulf %17, %2 : vector<8x1xf32>
    %19 = vector.broadcast %18 : vector<8x1xf32> to vector<8x16xf32>
    %20 = arith.mulf %9, %19 : vector<8x16xf32>
    %21 = vector.broadcast %3 : vector<8x1xf32> to vector<8x16xf32>
    %22 = arith.addf %20, %21 : vector<8x16xf32>
    %cst_10 = arith.constant 0.000000e+00 : f32
    %23 = vector.broadcast %cst_10 : f32 to vector<8x16xf32>
    %24 = arith.maximumf %22, %23 : vector<8x16xf32>
    %c0_11 = arith.constant 0 : index
    %c0_12 = arith.constant 0 : index
    %25 = vector.load %arg4[%c0_11, %c0_12] : memref<8x8xbf16, #tpu.memory_space<vmem>>, vector<8x8xbf16>
    %26 = arith.truncf %24 : vector<8x16xf32> to vector<8x16xbf16>
    %cst_13 = arith.constant dense<0.000000e+00> : vector<8x16xf32>
    %27 = tpu.matmul %25, %26, %cst_13 {dimension_numbers = #tpu.dot_dimension_numbers<[1], [0], [0], [1], [0, 0, 1, 1], [], []>} : vector<8x8xbf16>, vector<8x16xbf16>, vector<8x16xf32> -> vector<8x16xf32>
    %c0_14 = arith.constant 0 : index
    %c0_15 = arith.constant 0 : index
    %28 = vector.load %arg5[%c0_14, %c0_15] : memref<8x1xf32, #tpu.memory_space<vmem>>, vector<8x1xf32>
    %29 = vector.broadcast %28 : vector<8x1xf32> to vector<8x16xf32>
    %30 = arith.addf %27, %29 : vector<8x16xf32>
    %c0_16 = arith.constant 0 : index
    %c0_17 = arith.constant 0 : index
    %31 = vector.load %arg6[%c0_16, %c0_17] : memref<1x16xf32, #tpu.memory_space<vmem>>, vector<1x16xf32>
    %32 = vector.broadcast %31 : vector<1x16xf32> to vector<8x16xf32>
    %33 = arith.mulf %30, %32 : vector<8x16xf32>
    %c0_18 = arith.constant 0 : index
    %c0_19 = arith.constant 0 : index
    %34 = vector.load %arg7[%c0_18, %c0_19] : memref<1x16xf32, #tpu.memory_space<vmem>>, vector<1x16xf32>
    %35 = vector.broadcast %34 : vector<1x16xf32> to vector<8x16xf32>
    %36 = arith.addf %33, %35 : vector<8x16xf32>
    %cst_20 = arith.constant 0.000000e+00 : f32
    %37 = vector.broadcast %cst_20 : f32 to vector<8x16xf32>
    %38 = arith.maximumf %36, %37 : vector<8x16xf32>
    %39 = arith.truncf %38 : vector<8x16xf32> to vector<8x16xbf16>
    %c0_21 = arith.constant 0 : index
    %c0_22 = arith.constant 0 : index
    %40 = vector.load %arg8[%c0_21, %c0_22] : memref<16x16xbf16, #tpu.memory_space<vmem>>, vector<16x16xbf16>
    %cst_23 = arith.constant dense<0.000000e+00> : vector<8x16xf32>
    %41 = tpu.matmul %39, %40, %cst_23 {dimension_numbers = #tpu.dot_dimension_numbers<[1], [0], [0], [1], [0, 0, 1, 1], [], []>} : vector<8x16xbf16>, vector<16x16xbf16>, vector<8x16xf32> -> vector<8x16xf32>
    %42 = arith.addf %30, %41 : vector<8x16xf32>
    %c0_24 = arith.constant 0 : index
    %c0_25 = arith.constant 0 : index
    %43 = vector.load %arg9[%c0_24, %c0_25] : memref<1x16xf32, #tpu.memory_space<vmem>>, vector<1x16xf32>
    %44 = vector.broadcast %43 : vector<1x16xf32> to vector<8x16xf32>
    %45 = arith.addf %42, %44 : vector<8x16xf32>
    %c0_26 = arith.constant 0 : index
    %c0_27 = arith.constant 0 : index
    %46 = vector.load %arg10[%c0_26, %c0_27] : memref<8x1xf32, #tpu.memory_space<vmem>>, vector<8x1xf32>
    %c0_28 = arith.constant 0 : index
    %c0_29 = arith.constant 0 : index
    %47 = vector.load %arg11[%c0_28, %c0_29] : memref<8x1xf32, #tpu.memory_space<vmem>>, vector<8x1xf32>
    %cst_30 = arith.constant dense<0.000000e+00> : vector<8xf32>
    %48 = vector.multi_reduction <add>, %45, %cst_30 [1] : vector<8x16xf32> to vector<8xf32>
    %49 = vector.shape_cast %48 : vector<8xf32> to vector<8x1xf32>
    %cst_31 = arith.constant 1.600000e+01 : f32
    %50 = vector.broadcast %cst_31 : f32 to vector<8x1xf32>
    %51 = arith.divf %49, %50 : vector<8x1xf32>
    %52 = vector.broadcast %51 : vector<8x1xf32> to vector<8x16xf32>
    %53 = arith.subf %45, %52 : vector<8x16xf32>
    %54 = arith.mulf %53, %53 : vector<8x16xf32>
    %cst_32 = arith.constant dense<0.000000e+00> : vector<8xf32>
    %55 = vector.multi_reduction <add>, %54, %cst_32 [1] : vector<8x16xf32> to vector<8xf32>
    %56 = vector.shape_cast %55 : vector<8xf32> to vector<8x1xf32>
    %cst_33 = arith.constant 1.600000e+01 : f32
    %57 = vector.broadcast %cst_33 : f32 to vector<8x1xf32>
    %58 = arith.divf %56, %57 : vector<8x1xf32>
    %cst_34 = arith.constant 1.000000e-03 : f32
    %59 = vector.broadcast %cst_34 : f32 to vector<8x1xf32>
    %60 = arith.addf %58, %59 : vector<8x1xf32>
    %61 = math.rsqrt %60 : vector<8x1xf32>
    %62 = arith.mulf %61, %46 : vector<8x1xf32>
    %63 = vector.broadcast %62 : vector<8x1xf32> to vector<8x16xf32>
    %64 = arith.mulf %53, %63 : vector<8x16xf32>
    %65 = vector.broadcast %47 : vector<8x1xf32> to vector<8x16xf32>
    %66 = arith.addf %64, %65 : vector<8x16xf32>
    %cst_35 = arith.constant 0.000000e+00 : f32
    %67 = vector.broadcast %cst_35 : f32 to vector<8x16xf32>
    %68 = arith.maximumf %66, %67 : vector<8x16xf32>
    %c0_36 = arith.constant 0 : index
    %c0_37 = arith.constant 0 : index
    %69 = vector.load %arg12[%c0_36, %c0_37] : memref<8x8xbf16, #tpu.memory_space<vmem>>, vector<8x8xbf16>
    %70 = arith.truncf %68 : vector<8x16xf32> to vector<8x16xbf16>
    %cst_38 = arith.constant dense<0.000000e+00> : vector<8x16xf32>
    %71 = tpu.matmul %69, %70, %cst_38 {dimension_numbers = #tpu.dot_dimension_numbers<[1], [0], [0], [1], [0, 0, 1, 1], [], []>} : vector<8x8xbf16>, vector<8x16xbf16>, vector<8x16xf32> -> vector<8x16xf32>
    %c0_39 = arith.constant 0 : index
    %c0_40 = arith.constant 0 : index
    %72 = vector.load %arg13[%c0_39, %c0_40] : memref<8x1xf32, #tpu.memory_space<vmem>>, vector<8x1xf32>
    %73 = vector.broadcast %72 : vector<8x1xf32> to vector<8x16xf32>
    %74 = arith.addf %71, %73 : vector<8x16xf32>
    %75 = arith.addf %74, %1 : vector<8x16xf32>
    %c0_41 = arith.constant 0 : index
    %c0_42 = arith.constant 0 : index
    %c0_43 = arith.constant 0 : index
    %76 = vector.load %arg14[%c0_41, %c0_42, %c0_43] : memref<1x8x16xf32, #tpu.memory_space<vmem>>, vector<1x8x16xf32>
    %77 = vector.shape_cast %76 : vector<1x8x16xf32> to vector<8x16xf32>
    %78 = vector.shape_cast %75 : vector<8x16xf32> to vector<1x8x16xf32>
    tpu.vector_store %arg14[%c0_41, %c0_42, %c0_43], %78 {strides = array<i32>} : memref<1x8x16xf32, #tpu.memory_space<vmem>>, vector<1x8x16xf32>,
    return
  }
  func.func @transform_0(%arg0: i32) -> (i32, i32, i32) {
    %c0_i32 = arith.constant 0 : i32
    %c0_i32_0 = arith.constant 0 : i32
    %c0_i32_1 = arith.constant 0 : i32
    return %arg0, %c0_i32, %c0_i32_0 : i32, i32, i32
  }
  func.func @transform_1(%arg0: i32) -> (i32, i32) {
    %c0_i32 = arith.constant 0 : i32
    %c0_i32_0 = arith.constant 0 : i32
    %c0_i32_1 = arith.constant 0 : i32
    return %c0_i32, %c0_i32_0 : i32, i32
  }
  func.func @transform_2(%arg0: i32) -> (i32, i32) {
    %c0_i32 = arith.constant 0 : i32
    %c0_i32_0 = arith.constant 0 : i32
    %c0_i32_1 = arith.constant 0 : i32
    return %c0_i32, %c0_i32_0 : i32, i32
  }
  func.func @transform_3(%arg0: i32) -> (i32, i32) {
    %c0_i32 = arith.constant 0 : i32
    %c0_i32_0 = arith.constant 0 : i32
    %c0_i32_1 = arith.constant 0 : i32
    return %c0_i32, %c0_i32_0 : i32, i32
  }
  func.func @transform_4(%arg0: i32) -> (i32, i32) {
    %c0_i32 = arith.constant 0 : i32
    %c0_i32_0 = arith.constant 0 : i32
    %c0_i32_1 = arith.constant 0 : i32
    return %c0_i32, %c0_i32_0 : i32, i32
  }
  func.func @transform_5(%arg0: i32) -> (i32, i32) {
    %c0_i32 = arith.constant 0 : i32
    %c0_i32_0 = arith.constant 0 : i32
    %c0_i32_1 = arith.constant 0 : i32
    return %c0_i32, %c0_i32_0 : i32, i32
  }
  func.func @transform_6(%arg0: i32) -> (i32, i32) {
    %c0_i32 = arith.constant 0 : i32
    %c0_i32_0 = arith.constant 0 : i32
    %c0_i32_1 = arith.constant 0 : i32
    return %c0_i32, %c0_i32_0 : i32, i32
  }
  func.func @transform_7(%arg0: i32) -> (i32, i32) {
    %c0_i32 = arith.constant 0 : i32
    %c0_i32_0 = arith.constant 0 : i32
    %c0_i32_1 = arith.constant 0 : i32
    return %c0_i32, %c0_i32_0 : i32, i32
  }
  func.func @transform_8(%arg0: i32) -> (i32, i32) {
    %c0_i32 = arith.constant 0 : i32
    %c0_i32_0 = arith.constant 0 : i32
    %c0_i32_1 = arith.constant 0 : i32
    return %c0_i32, %c0_i32_0 : i32, i32
  }
  func.func @transform_9(%arg0: i32) -> (i32, i32) {
    %c0_i32 = arith.constant 0 : i32
    %c0_i32_0 = arith.constant 0 : i32
    %c0_i32_1 = arith.constant 0 : i32
    return %c0_i32, %c0_i32_0 : i32, i32
  }
  func.func @transform_10(%arg0: i32) -> (i32, i32) {
    %c0_i32 = arith.constant 0 : i32
    %c0_i32_0 = arith.constant 0 : i32
    %c0_i32_1 = arith.constant 0 : i32
    return %c0_i32, %c0_i32_0 : i32, i32
  }
  func.func @transform_11(%arg0: i32) -> (i32, i32) {
    %c0_i32 = arith.constant 0 : i32
    %c0_i32_0 = arith.constant 0 : i32
    %c0_i32_1 = arith.constant 0 : i32
    return %c0_i32, %c0_i32_0 : i32, i32
  }
  func.func @transform_12(%arg0: i32) -> (i32, i32) {
    %c0_i32 = arith.constant 0 : i32
    %c0_i32_0 = arith.constant 0 : i32
    %c0_i32_1 = arith.constant 0 : i32
    return %c0_i32, %c0_i32_0 : i32, i32
  }
  func.func @transform_13(%arg0: i32) -> (i32, i32, i32) {
    %c0_i32 = arith.constant 0 : i32
    %c0_i32_0 = arith.constant 0 : i32
    %c0_i32_1 = arith.constant 0 : i32
    return %arg0, %c0_i32, %c0_i32_0 : i32, i32, i32
  }
}

</mosaic_0001>

<bundles_post_ra>
// kernel: tpu_custom_call.1
= control target key start
LH: loop header
LB: loop body
LE: loop exit
PB: predicated region body
PF: predicated region fallthrough
CT: control target
= control target key end

     0   :  { %s1141_s0 = inlined_call_operand.vmem [shape: f32[2,8,16], index: 0, kind: input, shape index: {}]   ;;  %s1142_s1 = inlined_call_operand.vmem [shape: f32[8,1], index: 1, kind: input, shape index: {}]   ;;  %s1143_s2 = inlined_call_operand.vmem [shape: f32[8,1], index: 2, kind: input, shape index: {}]   ;;  %s1144_s3 = inlined_call_operand.vmem [shape: bf16[8,8], index: 3, kind: input, shape index: {}]   ;;  %s1145_s4 = inlined_call_operand.vmem [shape: f32[8,1], index: 4, kind: input, shape index: {}]   ;;  %s1146_s5 = inlined_call_operand.vmem [shape: f32[1,16], index: 5, kind: input, shape index: {}]   ;;  %s1147_s6 = inlined_call_operand.vmem [shape: f32[1,16], index: 6, kind: input, shape index: {}]   ;;  %s1148_s7 = inlined_call_operand.vmem [shape: bf16[16,16], index: 7, kind: input, shape index: {}]   ;;  %s1149_s8 = inlined_call_operand.vmem [shape: f32[1,16], index: 8, kind: input, shape index: {}]   ;;  %s1150_s9 = inlined_call_operand.vmem [shape: f32[8,1], index: 9, kind: input, shape index: {}]   ;;  %s1151_s10 = inlined_call_operand.vmem [shape: f32[8,1], index: 10, kind: input, shape index: {}]   ;;  %s1152_s11 = inlined_call_operand.vmem [shape: bf16[8,8], index: 11, kind: input, shape index: {}]   ;;  %s1153_s12 = inlined_call_operand.vmem [shape: f32[8,1], index: 12, kind: input, shape index: {}]   ;;  %s1154_s13 = inlined_call_operand.hbm [shape: f32[2,8,16], index: 13, kind: output, shape index: {}]  }
   0x1   :  { %1155 = sst [smem:[#allocation5_spill]] %s1141_s0 }
   0x2   :  { %1156 = sst [smem:[#allocation6_spill]] %s1142_s1 }
   0x3   :  { %1157 = sst [smem:[#allocation7_spill]] %s1143_s2 }
   0x4   :  { %18 = vsyncpa [#allocation3], 0 }
   0x5   :  { %20 = vsyncpa [#allocation3 + $0x1], 0  ;;  %s987_s25 = smov 0   ;;  %s989_s26 = smov 0  }
   0x6   :  { %s991_s27 = smov 0   ;;  %s993_s28 = smov 0  }
   0x7 LB: > { %s1008_s29 = sadd.s32 4294967295, %s911_s28   ;;  %s759_s30 = sadd.s32 4294967294, %s911_s28   ;;  %s911_s28 = sphi %s993_s28, %s1166_s28   ;;  %s907_s27 = sphi %s991_s27, %s1165_s27   ;;  %s903_s26 = sphi %s989_s26, %s1164_s26   ;;  %s899_s25 = sphi %s987_s25, %s1163_s25  }
   0x8   : > { %s1012_s14 = sadd.s32 1, %s911_s28   ;;  %s311_s15 = sadd.s32 1, %s907_s27 }
   0x9   : > { %s308_s16 = ssub.s32 %s911_s28, %s1012_s14  ;;  %p321_p0 = scmp.ne.s32.totalorder %s907_s27, %s903_s26 }
   0xa   : > { %p309_p1 = scmp.eq.s32.totalorder %s308_s16, 0  ;;  %p322_p2 = scmp.eq.s32.totalorder %s1008_s29, 1 }
   0xb   : > { %p327_p3 = scmp.ne.s32.totalorder %s903_s26, %s899_s25  ;;  %p328_p4 = scmp.eq.s32.totalorder %s759_s30, 1 }
   0xc   : > { %s1023_s17 = scalar_select %p309_p1, %s907_s27, %s311_s15  }
   0xd   : > { %p1025_p5 = por %p322_p2, %p321_p0  ;;  %p1029_p6 = por %p328_p4, %p327_p3 }
   0xe   : > { %p762_p7 = scmp.ge.s32.totalorder %s911_s28, 1  ;;  %p389_p8 = scmp.lt.s32.totalorder %s911_s28, 3 }
  0x10   : > { %p390_p9 = pnand %p762_p7, %p389_p8 }
  0x11   : > { %p432_p10 = scmp.lt.s32.totalorder (!%p390_p9), %s1008_s29, 1  ;;  %vm440_vm0 = vcmask (!%p390_p9), 130048   ;;  %s1160_s0 = sld [smem:[#allocation5_spill]] (!%p390_p9)  ;;  %v913_v7 = vmov (!%p390_p9), 0   ;;  %v914_v15 = vmov (!%p390_p9), 0.0   ;;  %vm915_vm1 = vmmov (!%p390_p9), 0  }
  0x12   : > { %393 = sbr.rel (%p390_p9) target bundleno = 1598 (0x63e), region = 72  ;;  %842 = vset.pattern.permute.xlu1 (!%p390_p9), %v913_v7  ;;  %843 = vset.pattern.permute.xlu0 (!%p390_p9), %v913_v7  ;;  %s1161_s1 = sld [smem:[#allocation6_spill]] (!%p390_p9)  ;;  %v470_v16 = vld [vmem:[%s1145_s4] sm:$0xff] (!%p390_p9)  ;;  %vm480_vm2 = vcmask (!%p390_p9), 1043456   ;;  %vm476_vm3 = vcmask (!%p390_p9), 64512  }
  0x13   : > { %s1162_s2 = sld [smem:[#allocation7_spill]] (!%p390_p9)  ;;  %782 = vmatprep.subr.bf16.mxu0 (!%p390_p9), %v914_v15  ;;  %788 = vmatprep.subr.bf16.mxu1 (!%p390_p9), %v914_v15  ;;  %v603_v17 = vld [vmem:[%s1151_s10] sm:$0xff] (!%p390_p9)  ;;  %s429_s30 = sand.u32 (!%p390_p9), 1, %s903_s26  }
  0x14   : > { %784 = vmatprep.mubr.msk.bf16.mxu0 (!%p390_p9), %vm915_vm1, %v914_v15  ;;  %790 = vmatprep.mubr.msk.bf16.mxu1 (!%p390_p9), %vm915_vm1, %v914_v15  ;;  %v632_v18 = vld [vmem:[%s1153_s12] sm:$0xff] (!%p390_p9)  ;;  %s763_s15 = sshll.u32 (!%p390_p9), %s429_s30, 3  ;;  %s773_s16 = sshll.u32 (!%p390_p9), %s1008_s29, 7 }
  0x15   : > { %v468_v26 = vld [vmem:[%s1144_s3] sm:$0xf] (!%p390_p9)  ;;  %s1098_s23 = scalar_lea.hbm (!%p390_p9), %s1154_s13, %s773_s16 }
  0x16   : > { %v844_v27 = vld [vmem:[%s1148_s7] sm:$0xff] (!%p390_p9)  }
  0x17   : > { %789 = vmatpush3.bf16.msra.mxu1 (!%p390_p9), %v844_v27  ;;  %v766_v30 = vld [vmem:[%s1146_s5] ss:$0 sm:$0xff] (!%p390_p9) }
  0x18   : > { %v438_v11 = vld [vmem:[%s1161_s1] sm:$0xff] (!%p390_p9) }
  0x19   : > { %s433_s20 = scalar_select %p432_p10, %s1008_s29, 1  ;;  %v439_v14 = vld [vmem:[%s1162_s2] sm:$0xff] }
  0x1a   : > { %v767_v33 = vld [vmem:[%s1147_s6] ss:$0 sm:$0xff]  ;;  %s687_s29 = scalar_lea.sflag [#allocation3], %s429_s30 }
  0x1b   : > { %s764_s21 = sshll.u32 %s433_s20, 3  ;;  %v770_v41 = vld [vmem:[%s1149_s8] ss:$0 sm:$0xff]  ;;  %s431_s20 = scalar_lea.vmem [#allocation2], %s763_s15 }
  0x1c   : > { %s435_s24 = scalar_lea.vmem %s1160_s0, %s764_s21  ;;  %v602_v56 = vld [vmem:[%s1150_s9] sm:$0xff]  ;;  %s700_s21 = sshll.u32 %s431_s20, 4  ;;  %s1100_s21 = int_to_ptr.vmem [resolvable:$true] %s700_s21 }
  0x1d   : > { %v1040_v0 = vld [vmem:[%s435_s24] sm:$0xff]  ;;  %s849_s24 = scalar_lea.vmem %s1100_s21, 128  ;;  %s916_s15 = smov [#allocation2]  }
  0x1e   : > { %v441_v1 = vsel %vm440_vm0, %v1040_v0, 0.0  ;;  %p850_p11 = scmp.ne.s32.totalorder %s1100_s21, %s849_s24  ;;  %s853_s1 = sshll.u32 %s916_s15, 4  ;;  %s854_s1 = int_to_ptr.vmem [resolvable:$false] %s853_s1 }
  0x1f   : > { %442 = vadd.xlane.f32.xlu0 %v441_v1  ;;  %s855_s2 = scalar_lea.vmem %s854_s1, 256  ;;  %p856_p0 = scmp.lt.s32.totalorder %s1100_s21, %s854_s1 }
  0x20   : > { %p851_p12 = pnand %p850_p11, %p1025_p5  ;;  %p857_p1 = scmp.lt.s32.totalorder %s855_s2, %s849_s24 }
  0x22   : > { %p852_p13 = pneg %p851_p12  ;;  %p858_p2 = por %p857_p1, %p856_p0 }
  0x24   : > { %p859_p3 = pnand %p858_p2, %p852_p13 }
  0xac   : > { %v443_v2 = vpop.xlane.xlu0 %442 }
  0xad   : > { %v445_v3 = vmul.f32 0.0625, %v443_v2 }
  0xaf   : > { %v446_v4 = vsub.f32 %v1040_v0, %v445_v3  ;;  %v630_v3 = vld [vmem:[%s1152_s11] sm:$0xf] }
  0xb1   : > { %v447_v5 = vmul.f32 %v446_v4, %v446_v4 }
  0xb3   : > { %v448_v6 = vsel %vm440_vm0, %v447_v5, 0.0 }
  0xb4   : > { %449 = vadd.xlane.f32.xlu0 %v448_v6 }
  0xca   : > { %473 = vperm.xlu0 %843, %v470_v16  }
  0xce   : > { %625 = vperm.xlu0 %843, %v603_v17  }
  0xd2   : > { %635 = vperm.xlu0 %843, %v632_v18  }
 0x141   : > { %v450_v8 = vpop.xlane.xlu0 %449 }
 0x142   : > { %v451_v9 = vmul.f32 0.0625, %v450_v8 }
 0x144   : > { %v452_v10 = vadd.f32 0.001, %v451_v9 }
 0x146   : > { %845 = vrsqrt.f32 %v452_v10 }
 0x149   : > { %v474_v28 = vpop.permute.xlu0 %473 }
 0x14d   : > { %v626_v61 = vpop.permute.xlu0 %625 }
 0x150   : > { %v846_v12 = vpop.eup %845 }
 0x151   : > { %v454_v13 = vmul.f32 %v846_v12, %v438_v11 }
 0x153   : > { %457 = vperm.xlu1 %842, %v454_v13  }
 0x157   : > { %463 = vperm.xlu1 %842, %v439_v14  }
 0x1d2   : > { %v458_v19 = vpop.permute.xlu1 %457 }
 0x1d3   : > { %v460_v20 = vmul.f32 %v458_v19, %v446_v4  ;;  %v636_v4 = vpop.permute.xlu0 %635 }
 0x1d6   : > { %v464_v21 = vpop.permute.xlu1 %463 }
 0x1d7   : > { %v466_v22 = vadd.f32 %v464_v21, %v460_v20 }
 0x1d9   : > { %v467_v23 = vmax.f32 %v466_v22, 0.0 }
 0x1db   : > { %v469_v24 = vpack.c.bf16 %v467_v23, %v467_v23 }
 0x1dd   : > { %v482_v25 = vsel %vm480_vm2, %v469_v24, 0 }
 0x1de   : > { %783 = vmatpush3.bf16.msra.mxu0 %v482_v25 }
 0x1df   : > { %794 = vmatprep.subr.bf16.mxu0 %v914_v15 }
 0x1e1   : > { %785 = vmatmul.mubr.msk.bf16.vlgmr.msra.gmra.mrb[0].mxu0 %vm476_vm3, %v468_v26 }
 0x1e2   : > { %796 = vmatprep.mubr.msk.bf16.mxu0 %vm915_vm1, %v914_v15 }
 0x2b4   : > { %v518_v29 = vpop.f32.mrb[0].mxu0 }
 0x2b5   : > { %v519_v31 = vadd.f32 %v518_v29, %v474_v28  ;;  %v786_v32 = vpop.f32.mrb[1].mxu0 }
 0x2b6   : > { %v521_v34 = vpop.f32.mrb[2].mxu0 }
 0x2b7   : > { %v531_v35 = vmul.f32 %v766_v30, %v519_v31  ;;  %v787_v36 = vpop.f32.mrb[3].mxu0 }
 0x2b9   : > { %v539_v37 = vadd.f32 %v767_v33, %v531_v35 }
 0x2bb   : > { %v540_v38 = vmax.f32 %v539_v37, 0.0 }
 0x2bd   : > { %v541_v39 = vpack.c.bf16 %v540_v38, %v540_v38 }
 0x2bf   : > { %791 = vmatmul.mubr.msk.bf16.vlgmr.msra.gmra.mrb[0].mxu1 %vm440_vm0, %v541_v39 }
 0x392   : > { %v587_v40 = vpop.f32.mrb[0].mxu1 }
 0x393   : > { %v593_v42 = vadd.f32 %v587_v40, %v519_v31  ;;  %v792_v43 = vpop.f32.mrb[1].mxu1 }
 0x394   : > { %v590_v44 = vpop.f32.mrb[2].mxu1 }
 0x395   : > { %v793_v45 = vpop.f32.mrb[3].mxu1  ;;  %v601_v46 = vadd.f32 %v770_v41, %v593_v42 }
 0x397   : > { %v604_v47 = vsel %vm440_vm0, %v601_v46, 0.0 }
 0x398   : > { %605 = vadd.xlane.f32.xlu1 %v604_v47 }
 0x425   : > { %v606_v48 = vpop.xlane.xlu1 %605 }
 0x426   : > { %v607_v49 = vmul.f32 0.0625, %v606_v48 }
 0x428   : > { %v608_v50 = vsub.f32 %v601_v46, %v607_v49 }
 0x42a   : > { %v609_v51 = vmul.f32 %v608_v50, %v608_v50 }
 0x42c   : > { %v610_v52 = vsel %vm440_vm0, %v609_v51, 0.0 }
 0x42d   : > { %611 = vadd.xlane.f32.xlu1 %v610_v52 }
 0x4ba   : > { %v612_v53 = vpop.xlane.xlu1 %611 }
 0x4bb   : > { %v613_v54 = vmul.f32 0.0625, %v612_v53 }
 0x4bd   : > { %v614_v55 = vadd.f32 0.001, %v613_v54 }
 0x4bf   : > { %847 = vrsqrt.f32 %v614_v55 }
 0x4c9   : > { %v848_v57 = vpop.eup %847 }
 0x4ca   : > { %v616_v58 = vmul.f32 %v848_v57, %v602_v56 }
 0x4cc   : > { %619 = vperm.xlu1 %842, %v616_v58  }
 0x54b   : > { %v620_v59 = vpop.permute.xlu1 %619 }
 0x54c   : > { %v622_v60 = vmul.f32 %v620_v59, %v608_v50 }
 0x54e   : > { %v628_v62 = vadd.f32 %v626_v61, %v622_v60 }
 0x550   : > { %v629_v63 = vmax.f32 %v628_v62, 0.0 }
 0x552   : > { %v631_v1 = vpack.c.bf16 %v629_v63, %v629_v63 }
 0x554   : > { %v642_v2 = vsel %vm480_vm2, %v631_v1, 0 }
 0x555   : > { %795 = vmatpush3.bf16.msra.mxu0 %v642_v2 }
 0x558   : > { %797 = vmatmul.mubr.msk.bf16.vlgmr.msra.gmra.mrb[4].mxu0 %vm476_vm3, %v630_v3 }
 0x62b   : > { %v678_v5 = vpop.f32.mrb[4].mxu0 }
 0x62c   : > { %v679_v6 = vadd.f32 %v678_v5, %v636_v4  ;;  %v798_v7 = vpop.f32.mrb[5].mxu0 }
 0x62d   : > { %v681_v8 = vpop.f32.mrb[6].mxu0 }
 0x62e   : > { %v684_v9 = vadd.f32 %v679_v6, %v1040_v0  ;;  %v799_v10 = vpop.f32.mrb[7].mxu0 }
 0x630   : > { %685 = vst.msk [vmem:[%s431_s20] sm:$0xff] %vm440_vm0, %v684_v9 }
 0x631   : > { %862 = shalt.err (!%p859_p3)
}
 0x632   : > { %s863_s0 = scalar_lea.hbm %s1098_s23, 128  ;;  %s867_s20 = scalar_lea.hbm %s1154_s13, 256 }
 0x633   : > { %p864_p4 = scmp.ne.s32.totalorder %s1098_s23, %s863_s0  ;;  %p868_p9 = scmp.lt.u32.totalorder %s1098_s23, %s1154_s13 }
 0x634   : > { %p869_p10 = scmp.lt.u32.totalorder %s867_s20, %s863_s0  ;;  %p871_p12 = scmp.lt.u32.totalorder %s863_s0, %s1098_s23 }
 0x635   : > { %p865_p7 = pnand %p864_p4, %p1025_p5 }
 0x636   : > { %p870_p11 = por %p869_p10, %p868_p9 }
 0x637   : > { %p866_p8 = pneg %p865_p7 }
 0x638   : > { %p872_p13 = por %p871_p12, %p870_p11 }
 0x63a   : > { %p873_p0 = pnand %p872_p13, %p866_p8 }
 0x63c   : > { %876 = shalt.err (!%p873_p0)
}
 0x63d   : > { %800 = dma.vmem_to_hbm [thread:$0]  (%p1025_p5), %s1100_s21, 128, %s1098_s23, %s687_s29  }
 0x63e PF: > { %p806_p1 = scmp.ge.s32.totalorder %s911_s28, 2  ;;  %s712_s2 = sand.u32 1, %s899_s25  }
 0x63f   : > { %s713_s24 = scalar_lea.sflag [#allocation3], %s712_s2 }
 0x640   : > { %p803_p2 = pnand %p806_p1, %p1029_p6 }
 0x642   : > { %894 = dma.done.wait (!%p803_p2), %s713_s24, 128  }
 0x643   : > { %896 = vsyncadd (!%p803_p2), %s713_s24, 4294967168  ;;  %p23_p3 = scmp.ge.s32.totalorder %s1012_s14, 4   ;;  %s1163_s25 = smov %s903_s26 }
 0x644   : > { %s1164_s26 = smov %s907_s27  ;;  %s1165_s27 = smov %s1023_s17 }
 0x645   : > { %s1166_s28 = smov %s1012_s14  ;;  %25 = sbr.rel (!%p23_p3) target bundleno = 7 (0x7), region = 107 }
 0x64c   :  { %718 = vsyncpa [#allocation3], 1 }
 0x64d   :  { %720 = vsyncpa [#allocation3 + $0x1], 1 }

</bundles_post_ra>
